<compile_context>
chip_gen: v6e
topology: v6e:2x2x1
jax: 0.10.0
libtpu: 0.0.40
codegen_flags: <defaults>
</compile_context>

<pallas_src>
import functools

import jax
import jax.numpy as jnp
from jax import lax
from jax.experimental import pallas as pl
from jax.experimental.pallas import tpu as pltpu

BN_EPS = 1e-5
LANE = 128


def _round_up(n, m):
    return (n + m - 1) // m * m


def _reduction_fc_kernel(x_ref, wconv_ref, gamma_ref, beta_ref, wfc_ref,
                         reduce_ref, bn_ref, fc_ref, acc_ref, *, mxu_dtype):
    # x_ref:      (B, K_pad)        flattened input (zero-padded feat_in)
    # wconv_ref:  (TC, K_pad)       conv1 weight tile, PyTorch (out, in) layout
    # gamma_ref:  (1, TC)
    # beta_ref:   (1, TC)
    # wfc_ref:    (NC_pad, TC)      fc weight tile, PyTorch (out, in) layout
    # reduce_ref: (B, TC)
    # bn_ref:     (B, TC)
    # fc_ref:     (B, NC_pad)       resident across the feat_out grid axis
    # acc_ref:    (B, NC_pad) f32   fc accumulator (VMEM scratch)
    j = pl.program_id(0)

    # 1x1 conv (no bias) == matmul; contract on feat_in, no weight transpose.
    red = lax.dot_general(
        x_ref[...].astype(mxu_dtype), wconv_ref[...].astype(mxu_dtype),
        dimension_numbers=(((1,), (1,)), ((), ())),
        preferred_element_type=jnp.float32)
    reduce_ref[...] = red

    # BatchNorm1d, training-mode batch statistics (biased variance), f32 math.
    mean = jnp.mean(red, axis=0, keepdims=True)
    centered = red - mean
    var = jnp.mean(centered * centered, axis=0, keepdims=True)
    scale = gamma_ref[...] * lax.rsqrt(var + BN_EPS)  # fold gamma * inv_std
    bn = centered * scale + beta_ref[...]
    bn_ref[...] = bn

    # Linear (no bias), accumulated over feat_out tiles.
    @pl.when(j == 0)
    def _():
        acc_ref[...] = jnp.zeros_like(acc_ref)

    acc_ref[...] += lax.dot_general(
        bn.astype(mxu_dtype), wfc_ref[...].astype(mxu_dtype),
        dimension_numbers=(((1,), (1,)), ((), ())),
        preferred_element_type=jnp.float32)

    @pl.when(j == pl.num_programs(0) - 1)
    def _():
        fc_ref[...] = acc_ref[...]


def reduction_fc(x, conv_w, bn_gamma, bn_beta, fc_w, *,
                 tile_cout=None, mxu_dtype=jnp.float32):
    """x: (B, feat_in, 1, 1) NCHW; conv_w: (feat_out, feat_in, 1, 1);
    bn_gamma/bn_beta: (feat_out,); fc_w: (num_classes, feat_out).

    Set mxu_dtype=jnp.bfloat16 on v6e/v7x to halve MXU operand bytes
    (accumulation stays f32)."""
    B, feat_in, H, W = x.shape
    assert H == 1 and W == 1, "BatchNorm1d(feat_out) implies 1x1 spatial input"
    feat_out = conv_w.shape[0]
    num_classes = fc_w.shape[0]

    # Lane-dense padded sizes.
    k_pad = _round_up(feat_in, LANE)
    c_pad = _round_up(feat_out, LANE)
    n_pad = _round_up(num_classes, LANE)
    if tile_cout is None:
        tile_cout = 256 if c_pad % 256 == 0 else LANE
    assert c_pad % tile_cout == 0
    n_tiles = c_pad // tile_cout

    f32 = jnp.float32
    x2d = jnp.pad(x.reshape(B, feat_in).astype(f32),
                  ((0, 0), (0, k_pad - feat_in)))
    wconv = jnp.pad(conv_w.reshape(feat_out, feat_in).astype(f32),
                    ((0, c_pad - feat_out), (0, k_pad - feat_in)))
    gamma = jnp.pad(bn_gamma.astype(f32).reshape(1, feat_out),
                    ((0, 0), (0, c_pad - feat_out)), constant_values=1.0)
    beta = jnp.pad(bn_beta.astype(f32).reshape(1, feat_out),
                   ((0, 0), (0, c_pad - feat_out)))
    wfc = jnp.pad(fc_w.astype(f32),
                  ((0, n_pad - num_classes), (0, c_pad - feat_out)))

    # Advisory scheduling hint for XLA around the custom call.
    flops = 2 * B * k_pad * c_pad + 2 * B * c_pad * n_pad + 8 * B * c_pad
    bytes_accessed = 4 * (x2d.size + wconv.size + gamma.size + beta.size
                          + wfc.size + 2 * B * c_pad + B * n_pad)
    cost = pl.CostEstimate(flops=flops, transcendentals=c_pad,
                           bytes_accessed=bytes_accessed)

    kernel = functools.partial(_reduction_fc_kernel, mxu_dtype=mxu_dtype)

    reduce_p, bn_p, fc_p = pl.pallas_call(
        kernel,
        out_shape=(
            jax.ShapeDtypeStruct((B, c_pad), f32),
            jax.ShapeDtypeStruct((B, c_pad), f32),
            jax.ShapeDtypeStruct((B, n_pad), f32),
        ),
        grid_spec=pltpu.PrefetchScalarGridSpec(
            num_scalar_prefetch=0,
            grid=(n_tiles,),
            in_specs=[
                pl.BlockSpec((B, k_pad), lambda j: (0, 0)),
                pl.BlockSpec((tile_cout, k_pad), lambda j: (j, 0)),
                pl.BlockSpec((1, tile_cout), lambda j: (0, j)),
                pl.BlockSpec((1, tile_cout), lambda j: (0, j)),
                pl.BlockSpec((n_pad, tile_cout), lambda j: (0, j)),
            ],
            out_specs=(
                pl.BlockSpec((B, tile_cout), lambda j: (0, j)),
                pl.BlockSpec((B, tile_cout), lambda j: (0, j)),
                pl.BlockSpec((B, n_pad), lambda j: (0, 0)),  # resident: accumulator
            ),
            scratch_shapes=[pltpu.VMEM((B, n_pad), jnp.float32)],
        ),
        compiler_params=pltpu.CompilerParams(
            # fc accumulates across the feat_out axis -> must run sequentially.
            dimension_semantics=("arbitrary",)),
        cost_estimate=cost,
    )(x2d, wconv, gamma, beta, wfc)

    # Slice padding back off on the host.
    return (reduce_p[:, :feat_out], bn_p[:, :feat_out], fc_p[:, :num_classes])


def init_params(key, feat_in, feat_out, num_classes):
    k_conv, k_bn, k_fc = jax.random.split(key, 3)
    # conv1: kaiming_normal_, mode='fan_in' -> std = sqrt(2 / fan_in)
    conv_w = jax.random.normal(k_conv, (feat_out, feat_in, 1, 1),
                               jnp.float32) * jnp.sqrt(2.0 / feat_in)
    # bn1: weight ~ N(1, 0.02), bias = 0
    bn_gamma = 1.0 + 0.02 * jax.random.normal(k_bn, (feat_out,), jnp.float32)
    bn_beta = jnp.zeros((feat_out,), jnp.float32)
    # fc: kaiming_normal_, mode='fan_out' -> std = sqrt(2 / fan_out)
    fc_w = jax.random.normal(k_fc, (num_classes, feat_out),
                             jnp.float32) * jnp.sqrt(2.0 / num_classes)
    return conv_w, bn_gamma, bn_beta, fc_w


if __name__ == "__main__":
    B, feat_in, feat_out, num_classes = 8, 32, 64, 16

    key = jax.random.PRNGKey(0)
    k_x, k_p = jax.random.split(key)
    x = jax.random.normal(k_x, (B, feat_in, 1, 1), jnp.float32)
    conv_w, bn_gamma, bn_beta, fc_w = init_params(k_p, feat_in, feat_out,
                                                  num_classes)

    reduce_out, bn_out, fc_out = reduction_fc(x, conv_w, bn_gamma, bn_beta, fc_w)
    jax.block_until_ready((reduce_out, bn_out, fc_out))

    # Sanity check against a pure-JAX reference of the same semantics.
    x2d = x.reshape(B, feat_in)
    ref_reduce = x2d @ conv_w.reshape(feat_out, feat_in).T
    mean = ref_reduce.mean(axis=0, keepdims=True)
    var = ((ref_reduce - mean) ** 2).mean(axis=0, keepdims=True)
    ref_bn = (ref_reduce - mean) / jnp.sqrt(var + BN_EPS) * bn_gamma + bn_beta
    ref_fc = ref_bn @ fc_w.T
    assert reduce_out.shape == (B, feat_out)
    assert bn_out.shape == (B, feat_out)
    assert fc_out.shape == (B, num_classes)
    assert jnp.allclose(reduce_out, ref_reduce, atol=1e-4, rtol=1e-4)
    assert jnp.allclose(bn_out, ref_bn, atol=1e-4, rtol=1e-4)
    assert jnp.allclose(fc_out, ref_fc, atol=1e-4, rtol=1e-4)

    # TODO(synk): BatchNorm running_mean/running_var buffer updates are not
    # part of the returned forward values and are not emulated here.
    print("KERNEL_OK")
</pallas_src>

<mosaic_0001>
module attributes {stable_mosaic.version = 11 : i64} {
  func.func @_reduction_fc_kernel(%arg0: i32, %arg1: memref<8x128xf32, #tpu.memory_space<vmem>>, %arg2: memref<128x128xf32, #tpu.memory_space<vmem>>, %arg3: memref<1x128xf32, #tpu.memory_space<vmem>>, %arg4: memref<1x128xf32, #tpu.memory_space<vmem>>, %arg5: memref<128x128xf32, #tpu.memory_space<vmem>>, %arg6: memref<8x128xf32, #tpu.memory_space<vmem>>, %arg7: memref<8x128xf32, #tpu.memory_space<vmem>>, %arg8: memref<8x128xf32, #tpu.memory_space<vmem>>, %arg9: memref<8x128xf32, #tpu.memory_space<vmem>>) attributes {dimension_semantics = [#tpu.dimension_semantics<arbitrary>], iteration_bounds = array<i64: 1>, scalar_prefetch = 0 : i64, scratch_operands = 1 : i64, tpu.core_type = #tpu.core_type<tc>, window_params = [{pipeline_mode = #tpu.pipeline_mode<synchronous>, transform_indices = @transform_0, window_bounds = array<i64: 8, 128>}, {transform_indices = @transform_1, window_bounds = array<i64: 128, 128>}, {transform_indices = @transform_2, window_bounds = array<i64: 1, 128>}, {transform_indices = @transform_3, window_bounds = array<i64: 1, 128>}, {transform_indices = @transform_4, window_bounds = array<i64: 128, 128>}, {transform_indices = @transform_5, window_bounds = array<i64: 8, 128>}, {transform_indices = @transform_6, window_bounds = array<i64: 8, 128>}, {pipeline_mode = #tpu.pipeline_mode<synchronous>, transform_indices = @transform_7, window_bounds = array<i64: 8, 128>}]} {
    %c0 = arith.constant 0 : index
    %c0_0 = arith.constant 0 : index
    %0 = vector.load %arg1[%c0, %c0_0] : memref<8x128xf32, #tpu.memory_space<vmem>>, vector<8x128xf32>
    %c0_1 = arith.constant 0 : index
    %c0_2 = arith.constant 0 : index
    %1 = vector.load %arg2[%c0_1, %c0_2] : memref<128x128xf32, #tpu.memory_space<vmem>>, vector<128x128xf32>
    %cst = arith.constant dense<0.000000e+00> : vector<8x128xf32>
    %2 = tpu.matmul %0, %1, %cst {dimension_numbers = #tpu.dot_dimension_numbers<[1], [1], [0], [0], [0, 0, 1, 0], [], []>} : vector<8x128xf32>, vector<128x128xf32>, vector<8x128xf32> -> vector<8x128xf32>
    %c0_3 = arith.constant 0 : index
    %c0_4 = arith.constant 0 : index
    %3 = vector.load %arg6[%c0_3, %c0_4] : memref<8x128xf32, #tpu.memory_space<vmem>>, vector<8x128xf32>
    tpu.vector_store %arg6[%c0_3, %c0_4], %2 {strides = array<i32>} : memref<8x128xf32, #tpu.memory_space<vmem>>, vector<8x128xf32>,
    %cst_5 = arith.constant dense<0.000000e+00> : vector<128xf32>
    %4 = vector.multi_reduction <add>, %2, %cst_5 [0] : vector<8x128xf32> to vector<128xf32>
    %5 = vector.shape_cast %4 : vector<128xf32> to vector<1x128xf32>
    %cst_6 = arith.constant 8.000000e+00 : f32
    %6 = vector.broadcast %cst_6 : f32 to vector<1x128xf32>
    %7 = arith.divf %5, %6 : vector<1x128xf32>
    %8 = vector.broadcast %7 : vector<1x128xf32> to vector<8x128xf32>
    %9 = arith.subf %2, %8 : vector<8x128xf32>
    %10 = arith.mulf %9, %9 : vector<8x128xf32>
    %cst_7 = arith.constant dense<0.000000e+00> : vector<128xf32>
    %11 = vector.multi_reduction <add>, %10, %cst_7 [0] : vector<8x128xf32> to vector<128xf32>
    %12 = vector.shape_cast %11 : vector<128xf32> to vector<1x128xf32>
    %cst_8 = arith.constant 8.000000e+00 : f32
    %13 = vector.broadcast %cst_8 : f32 to vector<1x128xf32>
    %14 = arith.divf %12, %13 : vector<1x128xf32>
    %c0_9 = arith.constant 0 : index
    %c0_10 = arith.constant 0 : index
    %15 = vector.load %arg3[%c0_9, %c0_10] : memref<1x128xf32, #tpu.memory_space<vmem>>, vector<1x128xf32>
    %cst_11 = arith.constant 9.99999974E-6 : f32
    %16 = vector.broadcast %cst_11 : f32 to vector<1x128xf32>
    %17 = arith.addf %14, %16 : vector<1x128xf32>
    %18 = math.rsqrt %17 : vector<1x128xf32>
    %19 = arith.mulf %15, %18 : vector<1x128xf32>
    %20 = vector.broadcast %19 : vector<1x128xf32> to vector<8x128xf32>
    %21 = arith.mulf %9, %20 : vector<8x128xf32>
    %c0_12 = arith.constant 0 : index
    %c0_13 = arith.constant 0 : index
    %22 = vector.load %arg4[%c0_12, %c0_13] : memref<1x128xf32, #tpu.memory_space<vmem>>, vector<1x128xf32>
    %23 = vector.broadcast %22 : vector<1x128xf32> to vector<8x128xf32>
    %24 = arith.addf %21, %23 : vector<8x128xf32>
    %c0_14 = arith.constant 0 : index
    %c0_15 = arith.constant 0 : index
    %25 = vector.load %arg7[%c0_14, %c0_15] : memref<8x128xf32, #tpu.memory_space<vmem>>, vector<8x128xf32>
    tpu.vector_store %arg7[%c0_14, %c0_15], %24 {strides = array<i32>} : memref<8x128xf32, #tpu.memory_space<vmem>>, vector<8x128xf32>,
    %c0_i32 = arith.constant 0 : i32
    %26 = arith.cmpi eq, %arg0, %c0_i32 : i32
    %27 = arith.extui %26 : i1 to i32
    %c0_i32_16 = arith.constant 0 : i32
    %28 = arith.cmpi ne, %27, %c0_i32_16 : i32
    scf.if %28 {
      %cst_26 = arith.constant 0.000000e+00 : f32
      %37 = vector.broadcast %cst_26 : f32 to vector<8x128xf32>
      %c0_27 = arith.constant 0 : index
      %c0_28 = arith.constant 0 : index
      %38 = vector.load %arg9[%c0_27, %c0_28] : memref<8x128xf32, #tpu.memory_space<vmem>>, vector<8x128xf32>
      tpu.vector_store %arg9[%c0_27, %c0_28], %37 {strides = array<i32>} : memref<8x128xf32, #tpu.memory_space<vmem>>, vector<8x128xf32>,
    } else {
    }
    %c0_17 = arith.constant 0 : index
    %c0_18 = arith.constant 0 : index
    %29 = vector.load %arg9[%c0_17, %c0_18] : memref<8x128xf32, #tpu.memory_space<vmem>>, vector<8x128xf32>
    %c0_19 = arith.constant 0 : index
    %c0_20 = arith.constant 0 : index
    %30 = vector.load %arg5[%c0_19, %c0_20] : memref<128x128xf32, #tpu.memory_space<vmem>>, vector<128x128xf32>
    %cst_21 = arith.constant dense<0.000000e+00> : vector<8x128xf32>
    %31 = tpu.matmul %24, %30, %cst_21 {dimension_numbers = #tpu.dot_dimension_numbers<[1], [1], [0], [0], [0, 0, 1, 0], [], []>} : vector<8x128xf32>, vector<128x128xf32>, vector<8x128xf32> -> vector<8x128xf32>
    %32 = arith.addf %29, %31 : vector<8x128xf32>
    %c0_22 = arith.constant 0 : index
    %c0_23 = arith.constant 0 : index
    %33 = vector.load %arg9[%c0_22, %c0_23] : memref<8x128xf32, #tpu.memory_space<vmem>>, vector<8x128xf32>
    tpu.vector_store %arg9[%c0_22, %c0_23], %32 {strides = array<i32>} : memref<8x128xf32, #tpu.memory_space<vmem>>, vector<8x128xf32>,
    %c0_i32_24 = arith.constant 0 : i32
    %34 = arith.cmpi eq, %arg0, %c0_i32_24 : i32
    %35 = arith.extui %34 : i1 to i32
    %c0_i32_25 = arith.constant 0 : i32
    %36 = arith.cmpi ne, %35, %c0_i32_25 : i32
    scf.if %36 {
      %c0_26 = arith.constant 0 : index
      %c0_27 = arith.constant 0 : index
      %37 = vector.load %arg9[%c0_26, %c0_27] : memref<8x128xf32, #tpu.memory_space<vmem>>, vector<8x128xf32>
      %c0_28 = arith.constant 0 : index
      %c0_29 = arith.constant 0 : index
      %38 = vector.load %arg8[%c0_28, %c0_29] : memref<8x128xf32, #tpu.memory_space<vmem>>, vector<8x128xf32>
      tpu.vector_store %arg8[%c0_28, %c0_29], %37 {strides = array<i32>} : memref<8x128xf32, #tpu.memory_space<vmem>>, vector<8x128xf32>,
    } else {
    }
    return
  }
  func.func @transform_0(%arg0: i32) -> (i32, i32) {
    %c0_i32 = arith.constant 0 : i32
    %c0_i32_0 = arith.constant 0 : i32
    %c0_i32_1 = arith.constant 0 : i32
    return %c0_i32, %c0_i32_0 : i32, i32
  }
  func.func @transform_1(%arg0: i32) -> (i32, i32) {
    %c0_i32 = arith.constant 0 : i32
    %c0_i32_0 = arith.constant 0 : i32
    return %arg0, %c0_i32 : i32, i32
  }
  func.func @transform_2(%arg0: i32) -> (i32, i32) {
    %c0_i32 = arith.constant 0 : i32
    %c0_i32_0 = arith.constant 0 : i32
    return %c0_i32, %arg0 : i32, i32
  }
  func.func @transform_3(%arg0: i32) -> (i32, i32) {
    %c0_i32 = arith.constant 0 : i32
    %c0_i32_0 = arith.constant 0 : i32
    return %c0_i32, %arg0 : i32, i32
  }
  func.func @transform_4(%arg0: i32) -> (i32, i32) {
    %c0_i32 = arith.constant 0 : i32
    %c0_i32_0 = arith.constant 0 : i32
    return %c0_i32, %arg0 : i32, i32
  }
  func.func @transform_5(%arg0: i32) -> (i32, i32) {
    %c0_i32 = arith.constant 0 : i32
    %c0_i32_0 = arith.constant 0 : i32
    return %c0_i32, %arg0 : i32, i32
  }
  func.func @transform_6(%arg0: i32) -> (i32, i32) {
    %c0_i32 = arith.constant 0 : i32
    %c0_i32_0 = arith.constant 0 : i32
    return %c0_i32, %arg0 : i32, i32
  }
  func.func @transform_7(%arg0: i32) -> (i32, i32) {
    %c0_i32 = arith.constant 0 : i32
    %c0_i32_0 = arith.constant 0 : i32
    %c0_i32_1 = arith.constant 0 : i32
    return %c0_i32, %c0_i32_0 : i32, i32
  }
}

</mosaic_0001>

<bundles_post_ra>
// kernel: tpu_custom_call.1
= control target key start
LH: loop header
LB: loop body
LE: loop exit
PB: predicated region body
PF: predicated region fallthrough
CT: control target
= control target key end

     0   :  { %13 = vsyncpa [#allocation4], 0  ;;  %s684_s0 = inlined_call_operand.hbm [shape: f32[8,128], index: 0, kind: input, shape index: {}]   ;;  %s685_s1 = inlined_call_operand.hbm [shape: f32[128,128], index: 1, kind: input, shape index: {}]   ;;  %s686_s2 = inlined_call_operand.vmem [shape: f32[1,128], index: 2, kind: input, shape index: {}]   ;;  %s687_s3 = inlined_call_operand.vmem [shape: f32[1,128], index: 3, kind: input, shape index: {}]   ;;  %s688_s4 = inlined_call_operand.hbm [shape: f32[128,128], index: 4, kind: input, shape index: {}]   ;;  %s689_s5 = inlined_call_operand.hbm [shape: f32[8,128], index: 5, kind: output, shape index: {0}]   ;;  %s690_s6 = inlined_call_operand.hbm [shape: f32[8,128], index: 6, kind: output, shape index: {1}]   ;;  %s691_s7 = inlined_call_operand.hbm [shape: f32[8,128], index: 7, kind: output, shape index: {2}]  }
   0x1   :  { %14 = vsyncpa [#allocation7], 0 }
   0x2   :  { %15 = vsyncpa [#allocation5], 0 }
   0x3   :  { %16 = vsyncpa [#allocation11], 0  ;;  %s576_s24 = smov [#allocation6]  }
   0x4   :  { %s32_s25 = sshll.u32 %s576_s24, 4  ;;  %s33_s25 = int_to_ptr.vmem [resolvable:$true] %s32_s25 }
   0x5   :  { %s456_s26 = scalar_lea.vmem %s33_s25, 2048  ;;  %p461_p1 = scmp.lt.s32.totalorder %s33_s25, %s33_s25 }
   0x6   :  { %p457_p0 = scmp.ne.s32.totalorder %s33_s25, %s456_s26  ;;  %p462_p2 = scmp.lt.s32.totalorder %s456_s26, %s456_s26 }
   0x8   :  { %p463_p3 = por %p462_p2, %p461_p1 }
   0xa   :  { %p464_p4 = pnand %p463_p3, %p457_p0 }
   0xc   :  { %467 = shalt.err (!%p464_p4)
}
   0xd   :  { %s577_s27 = smov 128   ;;  %s578_s28 = smov 8  }
   0xe   :  { %38 = dma.hbm_to_vmem [thread:$0]  %s685_s1, 2048, %s33_s25, [#allocation7], %s577_s27, %s577_s27, %s578_s28  }
   0xf   :  { %s579_s8 = smov [#allocation3]   ;;  %s580_s10 = smov [#allocation8]  }
  0x10   :  { %s23_s9 = sshll.u32 %s579_s8, 4  ;;  %s48_s11 = sshll.u32 %s580_s10, 4  ;;  %s24_s9 = int_to_ptr.vmem [resolvable:$true] %s23_s9  ;;  %s49_s11 = int_to_ptr.vmem [resolvable:$true] %s48_s11 }
  0x11   :  { %s476_s12 = scalar_lea.vmem %s24_s9, 128  ;;  %p481_p6 = scmp.lt.s32.totalorder %s24_s9, %s24_s9 }
  0x12   :  { %p477_p5 = scmp.ne.s32.totalorder %s24_s9, %s476_s12  ;;  %p482_p7 = scmp.lt.s32.totalorder %s476_s12, %s476_s12 }
  0x14   :  { %p483_p8 = por %p482_p7, %p481_p6 }
  0x16   :  { %p484_p9 = pnand %p483_p8, %p477_p5 }
  0x18   :  { %487 = shalt.err (!%p484_p9)
}
  0x19   :  { %26 = dma.hbm_to_vmem [thread:$0]  %s684_s0, 128, %s24_s9, [#allocation4]  }
  0x1a   :  { %s496_s15 = scalar_lea.vmem %s49_s11, 2048  ;;  %p501_p11 = scmp.lt.s32.totalorder %s49_s11, %s49_s11 }
  0x1b   :  { %p497_p10 = scmp.ne.s32.totalorder %s49_s11, %s496_s15  ;;  %p502_p12 = scmp.lt.s32.totalorder %s496_s15, %s496_s15 }
  0x1d   :  { %p503_p13 = por %p502_p12, %p501_p11 }
  0x1f   :  { %p504_p0 = pnand %p503_p13, %p497_p10 }
  0x21   :  { %507 = shalt.err (!%p504_p0)
}
  0x22   :  { %54 = dma.hbm_to_vmem [thread:$0]  %s688_s4, 2048, %s49_s11, [#allocation7], %s577_s27, %s577_s27, %s578_s28  }
  0x23   :  { %568 = dma.done.wait [#allocation4], 128  }
  0x24   :  { %569 = vsyncadd [#allocation4], 4294967168 }
  0x25   :  { %570 = dma.done.wait [#allocation7], 4096  }
  0x26   :  { %571 = vsyncadd [#allocation7], 4294963200  ;;  %v581_v0 = vmov 0.0   ;;  %vm582_vm0 = vmmov 0   ;;  %v80_v1 = vld [vmem:[#allocation6 + $0x78] sm:$0xff]  ;;  %v79_v2 = vld [vmem:[#allocation6 + $0x70] sm:$0xff]  ;;  %v174_v53 = vlaneseq }
  0x27   :  { %366 = vmatprep.subr.mxu0 %v581_v0  ;;  %398 = vmatprep.mubr.msk.f32.mxu0 %vm582_vm0, %v581_v0  ;;  %v210_v3 = vld [vmem:[#allocation8 + $0x78] sm:$0xff]  ;;  %v78_v4 = vld [vmem:[#allocation6 + $0x68] sm:$0xff]  ;;  %v209_v5 = vld [vmem:[#allocation8 + $0x70] sm:$0xff]  ;;  %s583_s19 = smov [#allocation10]   ;;  %s584_s21 = smov [#allocation9]  }
  0x28   :  { %401 = vmatprep.subr.mxu1 %v581_v0  ;;  %433 = vmatprep.mubr.msk.f32.mxu1 %vm582_vm0, %v581_v0  ;;  %v77_v6 = vld [vmem:[#allocation6 + $0x60] sm:$0xff]  ;;  %v76_v7 = vld [vmem:[#allocation6 + $0x58] sm:$0xff]  ;;  %v75_v8 = vld [vmem:[#allocation6 + $0x50] sm:$0xff]  ;;  %v175_v54 = vshrl.u32 %v174_v53, 7  ;;  %s304_s20 = sshll.u32 %s583_s19, 4  ;;  %s294_s22 = sshll.u32 %s584_s21, 4  ;;  %s305_s20 = int_to_ptr.vmem [resolvable:$true] %s304_s20  ;;  %s295_s22 = int_to_ptr.vmem [resolvable:$true] %s294_s22 }
  0x29   :  { %367 = vmatpush3.xpose.msra.mxu0 %v80_v1  ;;  %402 = vmatpush3.xpose.msra.mxu1 %v210_v3  ;;  %v74_v9 = vld [vmem:[#allocation6 + $0x48] sm:$0xff]  ;;  %v73_v10 = vld [vmem:[#allocation6 + $0x40] sm:$0xff]  ;;  %v72_v11 = vld [vmem:[#allocation6 + $0x38] sm:$0xff]  ;;  %s508_s23 = scalar_lea.vmem %s305_s20, 128  ;;  %p513_p2 = scmp.lt.s32.totalorder %s305_s20, %s305_s20 }
  0x2a   :  { %368 = vmatprep.subr.mxu0 %v581_v0  ;;  %403 = vmatprep.subr.mxu1 %v581_v0  ;;  %v71_v12 = vld [vmem:[#allocation6 + $0x30] sm:$0xff]  ;;  %v70_v13 = vld [vmem:[#allocation6 + $0x28] sm:$0xff]  ;;  %v69_v14 = vld [vmem:[#allocation6 + $0x20] sm:$0xff]  ;;  %v176_v56 = vsub.s32 0, %v175_v54  ;;  %p509_p1 = scmp.ne.s32.totalorder %s305_s20, %s508_s23  ;;  %p514_p3 = scmp.lt.s32.totalorder %s508_s23, %s508_s23 }
  0x2b   :  { %v68_v15 = vld [vmem:[#allocation6 + $0x18] sm:$0xff]  ;;  %v67_v16 = vld [vmem:[#allocation6 + $0x10] sm:$0xff]  ;;  %v66_v17 = vld [vmem:[#allocation6 + $0x8] sm:$0xff] }
  0x2c   :  { %v65_v18 = vld [vmem:[#allocation6] sm:$0xff]  ;;  %v64_v19 = vld [vmem:[#allocation3] sm:$0xff]  ;;  %v208_v20 = vld [vmem:[#allocation8 + $0x68] sm:$0xff]  ;;  %p515_p4 = por %p514_p3, %p513_p2 }
  0x2d   :  { %369 = vmatpush3.xpose.msra.mxu0 %v79_v2  ;;  %404 = vmatpush3.xpose.msra.mxu1 %v209_v5  ;;  %v207_v21 = vld [vmem:[#allocation8 + $0x60] sm:$0xff]  ;;  %v206_v22 = vld [vmem:[#allocation8 + $0x58] sm:$0xff]  ;;  %v205_v23 = vld [vmem:[#allocation8 + $0x50] sm:$0xff] }
  0x2e   :  { %370 = vmatprep.subr.mxu0 %v581_v0  ;;  %405 = vmatprep.subr.mxu1 %v581_v0  ;;  %v204_v24 = vld [vmem:[#allocation8 + $0x48] sm:$0xff]  ;;  %v203_v25 = vld [vmem:[#allocation8 + $0x40] sm:$0xff]  ;;  %v202_v26 = vld [vmem:[#allocation8 + $0x38] sm:$0xff]  ;;  %p516_p5 = pnand %p515_p4, %p509_p1 }
  0x2f   :  { %v201_v27 = vld [vmem:[#allocation8 + $0x30] sm:$0xff]  ;;  %v200_v28 = vld [vmem:[#allocation8 + $0x28] sm:$0xff]  ;;  %v199_v29 = vld [vmem:[#allocation8 + $0x20] sm:$0xff] }
  0x30   :  { %v198_v30 = vld [vmem:[#allocation8 + $0x18] sm:$0xff]  ;;  %v197_v31 = vld [vmem:[#allocation8 + $0x10] sm:$0xff]  ;;  %v196_v32 = vld [vmem:[#allocation8 + $0x8] sm:$0xff] }
  0x31   :  { %371 = vmatpush3.xpose.msra.mxu0 %v78_v4  ;;  %406 = vmatpush3.xpose.msra.mxu1 %v208_v20  ;;  %v195_v33 = vld [vmem:[#allocation8] sm:$0xff]  ;;  %v169_v55 = vld [vmem:[%s686_s2] sm:$0x1] }
  0x32   :  { %372 = vmatprep.subr.mxu0 %v581_v0  ;;  %407 = vmatprep.subr.mxu1 %v581_v0  ;;  %v331_v60 = vld [vmem:[%s687_s3] ss:$0 sm:$0xff] }
  0x35   :  { %373 = vmatpush3.xpose.msra.mxu0 %v77_v6  ;;  %408 = vmatpush3.xpose.msra.mxu1 %v207_v21 }
  0x36   :  { %374 = vmatprep.subr.mxu0 %v581_v0  ;;  %409 = vmatprep.subr.mxu1 %v581_v0 }
  0x39   :  { %375 = vmatpush3.xpose.msra.mxu0 %v76_v7  ;;  %410 = vmatpush3.xpose.msra.mxu1 %v206_v22 }
  0x3a   :  { %376 = vmatprep.subr.mxu0 %v581_v0  ;;  %411 = vmatprep.subr.mxu1 %v581_v0 }
  0x3d   :  { %377 = vmatpush3.xpose.msra.mxu0 %v75_v8  ;;  %412 = vmatpush3.xpose.msra.mxu1 %v205_v23 }
  0x3e   :  { %378 = vmatprep.subr.mxu0 %v581_v0  ;;  %413 = vmatprep.subr.mxu1 %v581_v0 }
  0x41   :  { %379 = vmatpush3.xpose.msra.mxu0 %v74_v9  ;;  %414 = vmatpush3.xpose.msra.mxu1 %v204_v24 }
  0x42   :  { %380 = vmatprep.subr.mxu0 %v581_v0  ;;  %415 = vmatprep.subr.mxu1 %v581_v0 }
  0x45   :  { %381 = vmatpush3.xpose.msra.mxu0 %v73_v10  ;;  %416 = vmatpush3.xpose.msra.mxu1 %v203_v25 }
  0x46   :  { %382 = vmatprep.subr.mxu0 %v581_v0  ;;  %417 = vmatprep.subr.mxu1 %v581_v0 }
  0x49   :  { %383 = vmatpush3.xpose.msra.mxu0 %v72_v11  ;;  %418 = vmatpush3.xpose.msra.mxu1 %v202_v26 }
  0x4a   :  { %384 = vmatprep.subr.mxu0 %v581_v0  ;;  %419 = vmatprep.subr.mxu1 %v581_v0 }
  0x4d   :  { %385 = vmatpush3.xpose.msra.mxu0 %v71_v12  ;;  %420 = vmatpush3.xpose.msra.mxu1 %v201_v27 }
  0x4e   :  { %386 = vmatprep.subr.mxu0 %v581_v0  ;;  %421 = vmatprep.subr.mxu1 %v581_v0 }
  0x51   :  { %387 = vmatpush3.xpose.msra.mxu0 %v70_v13  ;;  %422 = vmatpush3.xpose.msra.mxu1 %v200_v28 }
  0x52   :  { %388 = vmatprep.subr.mxu0 %v581_v0  ;;  %423 = vmatprep.subr.mxu1 %v581_v0 }
  0x55   :  { %389 = vmatpush3.xpose.msra.mxu0 %v69_v14  ;;  %424 = vmatpush3.xpose.msra.mxu1 %v199_v29 }
  0x56   :  { %390 = vmatprep.subr.mxu0 %v581_v0  ;;  %425 = vmatprep.subr.mxu1 %v581_v0 }
  0x59   :  { %391 = vmatpush3.xpose.msra.mxu0 %v68_v15  ;;  %426 = vmatpush3.xpose.msra.mxu1 %v198_v30 }
  0x5a   :  { %392 = vmatprep.subr.mxu0 %v581_v0  ;;  %427 = vmatprep.subr.mxu1 %v581_v0 }
  0x5d   :  { %393 = vmatpush3.xpose.msra.mxu0 %v67_v16  ;;  %428 = vmatpush3.xpose.msra.mxu1 %v197_v31 }
  0x5e   :  { %394 = vmatprep.subr.mxu0 %v581_v0  ;;  %429 = vmatprep.subr.mxu1 %v581_v0 }
  0x61   :  { %395 = vmatpush3.xpose.msra.mxu0 %v66_v17  ;;  %430 = vmatpush3.xpose.msra.mxu1 %v196_v32 }
  0x62   :  { %396 = vmatprep.subr.mxu0 %v581_v0  ;;  %431 = vmatprep.subr.mxu1 %v581_v0 }
  0x65   :  { %397 = vmatpush3.xpose.msra.mxu0 %v65_v18  ;;  %432 = vmatpush3.xpose.msra.mxu1 %v195_v33 }
  0x68   :  { %399 = vmatmul.mubr.f32.vlgmr.msra.gmra.mxu0 %v64_v19 }
 0x128   :  { %v147_v34 = vpop.f32.mrf.mxu0 }
 0x129   :  { %v152_v35 = vrot.slane %v147_v34, 4  ;;  %151 = vst [vmem:[#allocation9] sm:$0xff] %v147_v34 }
 0x12a   :  { %v400_v36 = vpop.f32.mrf.mxu0 }
 0x12b   :  { %v153_v37 = vadd.f32 %v152_v35, %v147_v34 }
 0x12d   :  { %v154_v38 = vrot.slane %v153_v37, 2 }
 0x12f   :  { %v155_v39 = vadd.f32 %v154_v38, %v153_v37 }
 0x131   :  { %v156_v40 = vrot.slane %v155_v39, 1 }
 0x133   :  { %v157_v41 = vadd.f32 %v156_v40, %v155_v39 }
 0x135   :  { %v159_v42 = vmul.f32 0.125, %v157_v41 }
 0x137   :  { %v160_v43 = vsub.f32 %v147_v34, %v159_v42 }
 0x139   :  { %v161_v44 = vmul.f32 %v160_v43, %v160_v43 }
 0x13b   :  { %v162_v45 = vrot.slane %v161_v44, 4 }
 0x13d   :  { %v163_v46 = vadd.f32 %v162_v45, %v161_v44 }
 0x13f   :  { %v164_v47 = vrot.slane %v163_v46, 2 }
 0x141   :  { %v165_v48 = vadd.f32 %v164_v47, %v163_v46 }
 0x143   :  { %v166_v49 = vrot.slane %v165_v48, 1 }
 0x145   :  { %v167_v50 = vadd.f32 %v166_v49, %v165_v48 }
 0x147   :  { %v168_v51 = vmul.f32 0.125, %v167_v50 }
 0x149   :  { %v170_v52 = vadd.f32 1e-05, %v168_v51 }
 0x14b   :  { %446 = vrsqrt.f32 %v170_v52 }
 0x158   :  { %v447_v57 = vpop.eup %446 }
 0x159   :  { %v172_v58 = vmul.f32 %v447_v57, %v169_v55 }
 0x15b   :  { %v177_v59 = vrot.slane %v172_v58, %v176_v56 }
 0x15d   :  { %v179_v61 = vmul.f32 %v177_v59, %v160_v43 }
 0x15f   :  { %v187_v62 = vadd.f32 %v331_v60, %v179_v61 }
 0x161   :  { %434 = vmatmul.mubr.f32.vlgmr.msra.gmra.mxu1 %v187_v62  ;;  %188 = vst [vmem:[#allocation10] sm:$0xff] %v187_v62 }
 0x162   :  { %519 = shalt.err (!%p516_p5)
}
 0x163   :  { %307 = dma.vmem_to_hbm [thread:$0]  %s305_s20, 128, %s690_s6, [#allocation11]  }
 0x164   :  { %s528_s3 = scalar_lea.vmem %s295_s22, 128  ;;  %p533_p7 = scmp.lt.s32.totalorder %s295_s22, %s295_s22 }
 0x165   :  { %p529_p6 = scmp.ne.s32.totalorder %s295_s22, %s528_s3  ;;  %p534_p8 = scmp.lt.s32.totalorder %s528_s3, %s528_s3 }
 0x167   :  { %p535_p9 = por %p534_p8, %p533_p7 }
 0x169   :  { %p536_p10 = pnand %p535_p9, %p529_p6 }
 0x16b   :  { %539 = shalt.err (!%p536_p10)
}
 0x16c   :  { %297 = dma.vmem_to_hbm [thread:$0]  %s295_s22, 128, %s689_s5, [#allocation5]  }
 0x16d   :  { %s585_s27 = smov [#allocation12]  }
 0x16e   :  { %s314_s28 = sshll.u32 %s585_s27, 4  ;;  %s315_s28 = int_to_ptr.vmem [resolvable:$true] %s314_s28 }
 0x16f   :  { %s548_s29 = scalar_lea.vmem %s315_s28, 128  ;;  %p553_p12 = scmp.lt.s32.totalorder %s315_s28, %s315_s28 }
 0x170   :  { %p549_p11 = scmp.ne.s32.totalorder %s315_s28, %s548_s29  ;;  %p554_p13 = scmp.lt.s32.totalorder %s548_s29, %s548_s29 }
 0x172   :  { %p555_p0 = por %p554_p13, %p553_p12 }
 0x174   :  { %p556_p1 = pnand %p555_p0, %p549_p11 }
 0x221   :  { %v277_v63 = vpop.f32.mrf.mxu1 }
 0x222   :  { %287 = vst [vmem:[#allocation12] sm:$0xff] %v277_v63 }
 0x223   :  { %v435_v0 = vpop.f32.mrf.mxu1 }
 0x224   :  { %559 = shalt.err (!%p556_p1)
}
 0x225   :  { %317 = dma.vmem_to_hbm [thread:$0]  %s315_s28, 128, %s691_s7, [#allocation11]  }
 0x226   :  { %572 = dma.done.wait [#allocation5], 128  }
 0x227   :  { %573 = vsyncadd [#allocation5], 4294967168 }
 0x228   :  { %574 = dma.done.wait [#allocation11], 256  }
 0x229   :  { %575 = vsyncadd [#allocation11], 4294967040 }
 0x22a   :  { %327 = vsyncpa [#allocation4], 1 }
 0x22b   :  { %328 = vsyncpa [#allocation7], 1 }
 0x22c   :  { %329 = vsyncpa [#allocation5], 1 }
 0x22d   :  { %330 = vsyncpa [#allocation11], 1 }

</bundles_post_ra>
